<compile_context>
chip_gen: v6e
topology: v6e:2x2x1
jax: 0.10.0
libtpu: 0.0.40
codegen_flags: <defaults>
</compile_context>

<pallas_src>
import functools

import jax
import jax.numpy as jnp
from jax import lax
from jax.experimental import pallas as pl
from jax.experimental.pallas import tpu as pltpu


# --------------------------------------------------------------------------
# Generation-aware VMEM budget / tile selection
# --------------------------------------------------------------------------
@functools.lru_cache(maxsize=None)
def _vmem_limit_bytes():
    """Scoped-VMEM limit ≈ 3/4 of physical: 96 MiB on 128-MiB parts (v5e/v6e),
    48 MiB on v7x's 64-MiB parts."""
    try:
        phys = int(getattr(pltpu.get_tpu_info(), "vmem_capacity_bytes", 0))
    except Exception:
        phys = 0
    if phys <= 0:
        phys = 128 * 1024 * 1024
    return min((phys * 3) // 4, 96 * 1024 * 1024)


_MXU_TILES = (512, 256, 128)   # 256-multiples keep the v6e/v7x 2x256^2 MXU full-width


def _divisor_tile(n, prefs=_MXU_TILES):
    for t in prefs:
        if t <= n and n % t == 0:
            return t
    # TODO(synk): pad ragged batch sizes up to a multiple of 128 in the wrapper
    # so large non-128-multiple batches do not fall back to one huge block.
    return n


def _k1_tiles(B, D, in_itemsize):
    """Asymmetric tiles for kernel 1: tn in {512,256,128}; tm grown until the
    double-buffered working set fills ~80% of the scoped VMEM budget."""
    if B <= 512:
        return B, B
    tn = _divisor_tile(B)
    budget = (_vmem_limit_bytes() * 4) // 5
    # per grid step (double buffered): img(tm,D) + txt_n_i(tm,D) + txt_j(tn,D)
    # + txt_n_j(tn,D) + two f32 (tm,tn) output tiles.
    per_tm = 2 * (2 * D * in_itemsize + 8 * tn)
    fixed = 2 * (2 * tn * D * in_itemsize)
    tm_max = max(0, (budget - fixed) // per_tm)
    if tm_max >= B:
        return B, tn
    for t in (4096, 2048, 1024, 512, 256, 128):
        if t <= tm_max and B % t == 0:
            return t, tn
    return tn, tn


def _k2_tiles(B):
    """Kernel-2 tiles: VMEM use is B-independent.  tr is capped at 256 so the
    diag-of-matmul cross term (tr^2 * bc MACs) stays hidden under the block DMA
    even on v5e's 197 TF/s MXU."""
    if B <= 512:
        return B, B
    tr = _divisor_tile(B, (256, 128))
    bc = _divisor_tile(B, (512, 256, 128))
    return tr, bc


# ----------------------------- Kernel 0: row L2-normalise --------------------
def _normalize_rows_kernel(x_ref, o_ref):
    x = x_ref[...].astype(jnp.float32)
    # per-norm clamp 1e-8  <=>  squared-norm clamp 1e-16 (matches torch
    # cosine_similarity for any non-degenerate input).
    inv = lax.rsqrt(jnp.maximum(jnp.sum(x * x, axis=-1, keepdims=True), 1e-16))
    o_ref[...] = (x * inv).astype(o_ref.dtype)


def normalize_rows(x, out_dtype=None):
    B, D = x.shape
    tb = B if B <= 1024 else _divisor_tile(B, (1024, 512, 256, 128))
    return pl.pallas_call(
        _normalize_rows_kernel,
        out_shape=jax.ShapeDtypeStruct((B, D), out_dtype or x.dtype),
        grid=(B // tb,),
        in_specs=[pl.BlockSpec((tb, D), lambda i: (i, 0))],
        out_specs=pl.BlockSpec((tb, D), lambda i: (i, 0)),
        compiler_params=pltpu.CompilerParams(
            dimension_semantics=("parallel",),
            vmem_limit_bytes=_vmem_limit_bytes()),
    )(x)


# ----------------------------- Kernel 1: logits + cosine sim -----------------
def _logits_sim_kernel(scale_ref, img_ref, txt_ref, txtn_i_ref, txtn_j_ref,
                       li_ref, sim_ref):
    dn = (((1,), (1,)), ((), ()))          # contract the last dim of both operands
    # logit_scale applied to the small f32 output tile (tm*tn work), not the
    # (tm, D) operand — no redundant per-(i,j) VPU scaling.
    li_ref[...] = scale_ref[0, 0] * lax.dot_general(
        img_ref[...], txt_ref[...], dn, preferred_element_type=jnp.float32)
    # cosine similarity: rows were normalised ONCE in the prologue kernel, so
    # the inner loop is pure MXU work here.
    sim_ref[...] = lax.dot_general(
        txtn_i_ref[...], txtn_j_ref[...], dn, preferred_element_type=jnp.float32)


def clip_logits_and_sim(image_features, text_features, text_normed, logit_scale):
    B, D = image_features.shape
    tm, tn = _k1_tiles(B, D, image_features.dtype.itemsize)
    scale = jnp.asarray(logit_scale, jnp.float32).reshape(1, 1)
    return pl.pallas_call(
        _logits_sim_kernel,
        out_shape=(jax.ShapeDtypeStruct((B, B), jnp.float32),    # logits_per_image
                   jax.ShapeDtypeStruct((B, B), jnp.float32)),   # text cosine sim
        grid=(B // tm, B // tn),
        in_specs=[
            pl.BlockSpec((1, 1), lambda i, j: (0, 0),
                         memory_space=pltpu.MemorySpace.SMEM),   # logit_scale
            pl.BlockSpec((tm, D), lambda i, j: (i, 0)),          # img rows (i-resident)
            pl.BlockSpec((tn, D), lambda i, j: (j, 0)),          # txt "cols"
            pl.BlockSpec((tm, D), lambda i, j: (i, 0)),          # txt_n rows (i-resident)
            pl.BlockSpec((tn, D), lambda i, j: (j, 0)),          # txt_n "cols"
        ],
        out_specs=(pl.BlockSpec((tm, tn), lambda i, j: (i, j)),
                   pl.BlockSpec((tm, tn), lambda i, j: (i, j))),
        # TODO(synk): optionally emit `sim` in bf16 to halve its HBM writeback;
        # kept f32 so top-k tie-breaking matches the f32 torch reference.
        compiler_params=pltpu.CompilerParams(
            dimension_semantics=("parallel", "parallel"),
            vmem_limit_bytes=_vmem_limit_bytes()),
    )(scale, image_features, text_features, text_normed, text_normed)


# ----------------------------- Kernel 2: fused soft cross-entropy ------------
def _soft_ce_kernel(idx_ref, cls_r_ref, cls_c_ref, sim_ref, li_r_ref, li_c_ref,
                    out_ref, m_r, l_r, m_c, l_c, rsum, dimg, dtxt):
    i = pl.program_id(0)            # row block of li / lt (parallel)
    c = pl.program_id(1)            # contraction chunk over the batch (arbitrary)
    tr, bc = sim_ref.shape
    k = idx_ref.shape[1]

    @pl.when(c == 0)
    def _init():
        m_r[...] = jnp.full(m_r.shape, -jnp.inf, jnp.float32)
        m_c[...] = jnp.full(m_c.shape, -jnp.inf, jnp.float32)
        l_r[...] = jnp.zeros(l_r.shape, jnp.float32)
        l_c[...] = jnp.zeros(l_c.shape, jnp.float32)
        rsum[...] = jnp.zeros(rsum.shape, jnp.float32)
        dimg[...] = jnp.zeros(dimg.shape, jnp.float32)
        dtxt[...] = jnp.zeros(dtxt.shape, jnp.float32)

    # ---- label numerator s = sim * mask_sim * mask_class, built in VMEM ------
    col_ids = c * bc + lax.broadcasted_iota(jnp.int32, (tr, bc), 1)
    row_ids = i * tr + lax.broadcasted_iota(jnp.int32, (tr, bc), 0)
    idx_blk = idx_ref[...]                                 # (tr, k) top-k neighbour ids
    keep = col_ids == row_ids                              # fill_diagonal_(1)
    for kk in range(k):                                    # scatter_(1, idx, 1); k is static
        keep = jnp.logical_or(keep, col_ids == idx_blk[:, kk:kk + 1])
    keep = jnp.logical_and(keep, cls_r_ref[...] == cls_c_ref[...])  # class mask
    s = jnp.where(keep, sim_ref[...], 0.0)

    li_r = li_r_ref[...]          # (tr, bc)  rows of logits_per_image
    li_c = li_c_ref[...]          # (bc, tr)  cols of li == rows of logits_per_text

    # ---- online logsumexp: rows (image CE) and columns (text CE) of li -------
    mr_new = jnp.maximum(m_r[...], jnp.max(li_r, axis=-1, keepdims=True))
    l_r[...] = l_r[...] * jnp.exp(m_r[...] - mr_new) + jnp.sum(
        jnp.exp(li_r - mr_new), axis=-1, keepdims=True)
    m_r[...] = mr_new

    mc_new = jnp.maximum(m_c[...], jnp.max(li_c, axis=0, keepdims=True))
    l_c[...] = l_c[...] * jnp.exp(m_c[...] - mc_new) + jnp.sum(
        jnp.exp(li_c - mc_new), axis=0, keepdims=True)
    m_c[...] = mc_new

    # ---- per-row partial sums (kept as (tr,1) vregs; scalar collapse at end) -
    rsum[...] += jnp.sum(s, axis=-1, keepdims=True)
    dimg[...] += jnp.sum(s * li_r, axis=-1, keepdims=True)
    # sum_j s[r,j] * li[j,r]  ==  diag(s @ li_c): the MXU is otherwise idle in
    # this kernel and tr <= 256, so the waste stays hidden under the block DMA.
    cross = lax.dot_general(s, li_c, (((1,), (0,)), ((), ())),
                            preferred_element_type=jnp.float32)        # (tr, tr)
    eye = (lax.broadcasted_iota(jnp.int32, (tr, tr), 0) ==
           lax.broadcasted_iota(jnp.int32, (tr, tr), 1))
    dtxt[...] += jnp.sum(jnp.where(eye, cross, 0.0), axis=-1, keepdims=True)

    # ---- finalize this row block ---------------------------------------------
    @pl.when(c == pl.num_programs(1) - 1)
    def _finalize():
        lse_r = m_r[...] + jnp.log(l_r[...])      # (tr, 1)  image-side logsumexp
        lse_c = m_c[...] + jnp.log(l_c[...])      # (1, tr)  text-side logsumexp
        # labels = s / rowsum(s)  =>  per-row loss =
        #   lse_img + lse_txt - (sum_j s*li_row + sum_j s*li_col) / rowsum(s)
        picked = (dimg[...] + dtxt[...]) / rsum[...]
        out_ref[0, 0] = jnp.sum(lse_r - picked) + jnp.sum(lse_c)


def soft_ce_loss_fused(logits_per_image, sim, topk_idx, img_index):
    B = logits_per_image.shape[0]
    k = topk_idx.shape[1]
    tr, bc = _k2_tiles(B)
    n_i, n_c = B // tr, B // bc
    cls_row = img_index.reshape(B, 1)
    cls_col = img_index.reshape(1, B)
    partials = pl.pallas_call(
        _soft_ce_kernel,
        out_shape=jax.ShapeDtypeStruct((n_i, 1), jnp.float32),
        grid=(n_i, n_c),
        in_specs=[
            pl.BlockSpec((tr, k), lambda i, c: (i, 0)),     # top-k neighbour ids
            pl.BlockSpec((tr, 1), lambda i, c: (i, 0)),     # img_index (row layout)
            pl.BlockSpec((1, bc), lambda i, c: (0, c)),     # img_index (col layout)
            pl.BlockSpec((tr, bc), lambda i, c: (i, c)),    # sim row band
            pl.BlockSpec((tr, bc), lambda i, c: (i, c)),    # li row band (image CE)
            pl.BlockSpec((bc, tr), lambda i, c: (c, i)),    # li col band (text CE)
        ],
        out_specs=pl.BlockSpec((1, 1), lambda i, c: (i, 0),
                               memory_space=pltpu.MemorySpace.SMEM),
        scratch_shapes=[
            pltpu.VMEM((tr, 1), jnp.float32),   # m_r  running row max
            pltpu.VMEM((tr, 1), jnp.float32),   # l_r  running row sum-exp
            pltpu.VMEM((1, tr), jnp.float32),   # m_c  running col max
            pltpu.VMEM((1, tr), jnp.float32),   # l_c  running col sum-exp
            pltpu.VMEM((tr, 1), jnp.float32),   # rowsum(s)
            pltpu.VMEM((tr, 1), jnp.float32),   # sum_j s * li_row
            pltpu.VMEM((tr, 1), jnp.float32),   # sum_j s * li_col
        ],
        compiler_params=pltpu.CompilerParams(
            dimension_semantics=("parallel", "arbitrary"),
            vmem_limit_bytes=_vmem_limit_bytes()),
    )(topk_idx, cls_row, cls_col, sim, logits_per_image, logits_per_image)
    return jnp.sum(partials) * (0.5 / B)


# ----------------------------- Wrapper (ClipLoss.forward) --------------------
def clip_loss_forward(image_features, text_features, logit_scale, img_index,
                      top_k=10, mxu_dtype=None):
    """world_size == 1 forward.  Pass mxu_dtype=jnp.bfloat16 to feed the MXU
    bf16 operands (f32 accumulation); kept off by default so top-k / labels
    exactly match the f32 torch reference."""
    B, D = text_features.shape

    txt_n = normalize_rows(text_features,
                           out_dtype=mxu_dtype or text_features.dtype)
    img = image_features if mxu_dtype is None else image_features.astype(mxu_dtype)
    txt = text_features if mxu_dtype is None else text_features.astype(mxu_dtype)

    li, sim = clip_logits_and_sim(img, txt, txt_n, logit_scale)

    # ---- torch.no_grad() glue: only the top-k search stays in XLA ------------
    # TODO(synk): lax.top_k has no clean Pallas TPU equivalent; the scatter mask,
    # class mask, masked sim and row normalisation are all fused into kernel 2.
    k = top_k if top_k < B else B
    eye = jnp.eye(B, dtype=bool)
    _, idx = lax.top_k(jnp.where(eye, 0.0, sim), k)       # fill_diagonal_(0) + topk

    return soft_ce_loss_fused(li, sim, idx.astype(jnp.int32),
                              img_index.astype(jnp.int32))


# ----------------------------- Pure-JAX reference ----------------------------
def _reference_loss(image_features, text_features, logit_scale, img_index, top_k):
    img = image_features.astype(jnp.float32)
    txt = text_features.astype(jnp.float32)
    B = txt.shape[0]
    li = logit_scale * img @ txt.T
    lt = logit_scale * txt @ img.T
    n = jnp.maximum(jnp.sqrt(jnp.sum(txt * txt, axis=-1, keepdims=True)), 1e-8)
    sim = (txt @ txt.T) / (n * n.T)
    eye = jnp.eye(B, dtype=bool)
    k = top_k if top_k < B else B
    _, ind = jax.lax.top_k(jnp.where(eye, 0.0, sim), k)
    mask_sim = jnp.zeros((B, B), jnp.float32).at[jnp.arange(B)[:, None], ind].set(1.0)
    mask_sim = jnp.where(eye, 1.0, mask_sim)
    mask_class = (img_index[:, None] == img_index[None, :]).astype(jnp.float32)
    s = sim * mask_sim * mask_class
    labels = s / jnp.sum(s, axis=1, keepdims=True)

    def ce(lg):
        lse = jax.nn.logsumexp(lg, axis=-1, keepdims=True)
        return jnp.mean(jnp.sum(labels * (lse - lg), axis=-1))

    return 0.5 * (ce(li) + ce(lt))


if __name__ == "__main__":
    key = jax.random.PRNGKey(0)
    k1, k2 = jax.random.split(key)

    B, D = 16, 32          # small shapes: batch=16, feature dim=32
    TOP_K = 4

    image_features = jax.random.normal(k1, (B, D), dtype=jnp.float32)
    text_features = jax.random.normal(k2, (B, D), dtype=jnp.float32)
    logit_scale = jnp.float32(14.2857)                 # ~ exp(log(1/0.07))
    img_index = jnp.arange(B, dtype=jnp.int32) // 2    # paired class labels

    loss = clip_loss_forward(image_features, text_features, logit_scale,
                             img_index, top_k=TOP_K)
    loss = jax.block_until_ready(loss)

    ref = _reference_loss(image_features, text_features, logit_scale,
                          img_index, TOP_K)
    assert jnp.abs(loss - ref) < 1e-3, (loss, ref)

    print("KERNEL_OK")
</pallas_src>

<mosaic_0001>
module attributes {stable_mosaic.version = 11 : i64} {
  func.func @_normalize_rows_kernel(%arg0: i32, %arg1: memref<16x32xf32, #tpu.memory_space<vmem>>, %arg2: memref<16x32xf32, #tpu.memory_space<vmem>>) attributes {dimension_semantics = [#tpu.dimension_semantics<parallel>], iteration_bounds = array<i64: 1>, scalar_prefetch = 0 : i64, scratch_operands = 0 : i64, tpu.core_type = #tpu.core_type<tc>, window_params = [{transform_indices = @transform_0, window_bounds = array<i64: 16, 32>}, {transform_indices = @transform_1, window_bounds = array<i64: 16, 32>}]} {
    %c0 = arith.constant 0 : index
    %c0_0 = arith.constant 0 : index
    %0 = vector.load %arg1[%c0, %c0_0] : memref<16x32xf32, #tpu.memory_space<vmem>>, vector<16x32xf32>
    %1 = arith.mulf %0, %0 : vector<16x32xf32>
    %cst = arith.constant dense<0.000000e+00> : vector<16xf32>
    %2 = vector.multi_reduction <add>, %1, %cst [1] : vector<16x32xf32> to vector<16xf32>
    %3 = vector.shape_cast %2 : vector<16xf32> to vector<16x1xf32>
    %cst_1 = arith.constant 1.000000e-16 : f32
    %4 = vector.broadcast %cst_1 : f32 to vector<16x1xf32>
    %5 = arith.maximumf %3, %4 : vector<16x1xf32>
    %6 = math.rsqrt %5 : vector<16x1xf32>
    %7 = vector.broadcast %6 : vector<16x1xf32> to vector<16x32xf32>
    %8 = arith.mulf %0, %7 : vector<16x32xf32>
    %c0_2 = arith.constant 0 : index
    %c0_3 = arith.constant 0 : index
    %9 = vector.load %arg2[%c0_2, %c0_3] : memref<16x32xf32, #tpu.memory_space<vmem>>, vector<16x32xf32>
    tpu.vector_store %arg2[%c0_2, %c0_3], %8 {strides = array<i32>} : memref<16x32xf32, #tpu.memory_space<vmem>>, vector<16x32xf32>,
    return
  }
  func.func @transform_0(%arg0: i32) -> (i32, i32) {
    %c0_i32 = arith.constant 0 : i32
    %c0_i32_0 = arith.constant 0 : i32
    return %arg0, %c0_i32 : i32, i32
  }
  func.func @transform_1(%arg0: i32) -> (i32, i32) {
    %c0_i32 = arith.constant 0 : i32
    %c0_i32_0 = arith.constant 0 : i32
    return %arg0, %c0_i32 : i32, i32
  }
}

</mosaic_0001>

<bundles_post_ra>
// kernel: tpu_custom_call.1
= control target key start
LH: loop header
LB: loop body
LE: loop exit
PB: predicated region body
PF: predicated region fallthrough
CT: control target
= control target key end

     0   :  { %6 = vsyncpa [#allocation3], 0  ;;  %s141_s0 = inlined_call_operand.hbm [shape: f32[16,32], index: 0, kind: input, shape index: {}]   ;;  %s142_s1 = inlined_call_operand.hbm [shape: f32[16,32], index: 1, kind: output, shape index: {}]  }
   0x1   :  { %7 = vsyncpa [#allocation4], 0  ;;  %s111_s6 = smov [#allocation2]  }
   0x2   :  { %s13_s7 = sshll.u32 %s111_s6, 4  ;;  %s14_s7 = int_to_ptr.vmem [resolvable:$true] %s13_s7 }
   0x3   :  { %s75_s8 = scalar_lea.vmem %s14_s7, 256  ;;  %p80_p1 = scmp.lt.s32.totalorder %s14_s7, %s14_s7 }
   0x4   :  { %p76_p0 = scmp.ne.s32.totalorder %s14_s7, %s75_s8  ;;  %p81_p2 = scmp.lt.s32.totalorder %s75_s8, %s75_s8 }
   0x6   :  { %p82_p3 = por %p81_p2, %p80_p1 }
   0x8   :  { %p83_p4 = pnand %p82_p3, %p76_p0 }
   0xa   :  { %86 = shalt.err (!%p83_p4)
}
   0xb   :  { %s112_s9 = smov 128   ;;  %s113_s10 = smov 8  }
   0xc   :  { %19 = dma.hbm_to_vmem [thread:$0]  %s141_s0, 256, %s14_s7, [#allocation3], %s112_s9, %s112_s9, %s113_s10  }
   0xd   :  { %107 = dma.done.wait [#allocation3], 256  }
   0xe   :  { %108 = vsyncadd [#allocation3], 4294967040  ;;  %v23_v0 = vld [vmem:[#allocation2] sm:$0xff]  ;;  %vm27_vm0 = vcmask 261120   ;;  %v24_v1 = vld [vmem:[#allocation2 + $0x8] sm:$0xff]  ;;  %s114_s0 = smov [#allocation5]  }
   0xf   :  { %v25_v2 = vmul.f32 %v23_v0, %v23_v0  ;;  %v26_v3 = vmul.f32 %v24_v1, %v24_v1  ;;  %s47_s13 = sshll.u32 %s114_s0, 4  ;;  %s48_s13 = int_to_ptr.vmem [resolvable:$true] %s47_s13 }
  0x10   :  { %s87_s14 = scalar_lea.vmem %s48_s13, 256  ;;  %p92_p6 = scmp.lt.s32.totalorder %s48_s13, %s48_s13 }
  0x11   :  { %v28_v4 = vsel %vm27_vm0, %v25_v2, 0.0  ;;  %v31_v5 = vsel %vm27_vm0, %v26_v3, 0.0  ;;  %p88_p5 = scmp.ne.s32.totalorder %s48_s13, %s87_s14  ;;  %p93_p7 = scmp.lt.s32.totalorder %s87_s14, %s87_s14 }
  0x12   :  { %29 = vadd.xlane.f32.xlu0 %v28_v4 }
  0x13   :  { %p94_p8 = por %p93_p7, %p92_p6 }
  0x15   :  { %p95_p9 = pnand %p94_p8, %p88_p5 }
  0x16   :  { %32 = vadd.xlane.f32.xlu0 %v31_v5 }
  0x9b   :  { %v30_v6 = vpop.xlane.xlu0 %29 }
  0x9c   :  { %v34_v7 = vmax.f32 %v30_v6, 1e-16 }
  0x9e   :  { %63 = vrsqrt.f32 %v34_v7 }
  0x9f   :  { %v33_v8 = vpop.xlane.xlu0 %32 }
  0xa0   :  { %v35_v9 = vmax.f32 %v33_v8, 1e-16 }
  0xa2   :  { %65 = vrsqrt.f32 %v35_v9 }
  0xab   :  { %v64_v10 = vpop.eup %63 }
  0xac   :  { %v38_v11 = vmul.f32 %v64_v10, %v23_v0 }
  0xae   :  { %40 = vst.msk [vmem:[#allocation5] sm:$0xff] %vm27_vm0, %v38_v11 }
  0xaf   :  { %v66_v12 = vpop.eup %65 }
  0xb0   :  { %v39_v13 = vmul.f32 %v66_v12, %v24_v1 }
  0xb2   :  { %41 = vst.msk [vmem:[#allocation5 + $0x8] sm:$0xff] %vm27_vm0, %v39_v13 }
  0xb3   :  { %98 = shalt.err (!%p95_p9)
}
  0xb4   :  { %53 = dma.vmem_to_hbm [thread:$0]  %s48_s13, 256, %s142_s1, [#allocation4], %s112_s9, %s112_s9, %s113_s10  }
  0xb5   :  { %109 = dma.done.wait [#allocation4], 256  }
  0xb6   :  { %110 = vsyncadd [#allocation4], 4294967040 }
  0xb7   :  { %57 = vsyncpa [#allocation3], 1 }
  0xb8   :  { %58 = vsyncpa [#allocation4], 1 }

</bundles_post_ra>
